<compile_context>
chip_gen: v7x
topology: tpu7x:2x2x1
jax: 0.10.0
libtpu: 0.0.40
codegen_flags: <defaults>
</compile_context>

<pallas_src>
import jax
import jax.numpy as jnp
from jax import lax
from jax.experimental import pallas as pl
from jax.experimental.pallas import tpu as pltpu


_LAYERS = ('conv1', 'relu1', 'pool1', 'fc')


# ---------------------------------------------------------------------------
# Fused kernel factory: conv1 (im2col matmul) -> relu1 -> pool1 -> fc, emitting
# only the requested outputs.  All operands are small slabs resident in VMEM.
# ---------------------------------------------------------------------------
def _make_kernel(want_conv, want_relu, want_pool, want_fc):
    def kernel(xcol_ref, wcT_ref, bc_ref, wf_ref, bf_ref, *out_refs):
        it = iter(out_refs)
        conv_ref = next(it) if want_conv else None
        relu_ref = next(it) if want_relu else None
        pool_ref = next(it) if want_pool else None
        fc_ref = next(it) if want_fc else None

        B = xcol_ref.shape[0]
        HW = xcol_ref.shape[2]

        wcT = wcT_ref[...]                 # (Cout, 9*Cin)
        bc = bc_ref[...]                   # (Cout, 1)
        wf = wf_ref[...]                   # (N, Cout)
        bf = bf_ref[...]                   # (N, 1)
        need_pool = want_pool or want_fc

        # Static unroll over the (small) batch: one K=9*Cin MXU push per image;
        # activations never leave VMEM/vregs between layers.  At scale this loop
        # becomes a "parallel" grid axis instead (see module docstring).
        for b in range(B):
            # conv1: single im2col matmul per image, lane-dense (Cout, H*W).
            cb = jnp.dot(wcT, xcol_ref[b],
                         preferred_element_type=jnp.float32) + bc   # (Cout, HW)
            if conv_ref is not None:
                conv_ref[b] = cb            # 256-lane-wide unmasked stores
            # relu1: VPU elementwise, effectively free under the MXU push.
            rb = jnp.maximum(cb, 0.0)
            if relu_ref is not None:
                relu_ref[b] = rb
            if need_pool:
                # pool1: global average pool as a lane reduction on the XLU.
                pb = jnp.sum(rb, axis=-1, keepdims=True) * (1.0 / HW)  # (Cout,1)
                if pool_ref is not None:
                    pool_ref[b] = pb
                if fc_ref is not None:
                    # fc: (N, Cout) @ (Cout, 1) + bias, tiny MXU push.
                    fc_ref[b] = jnp.dot(wf, pb,
                                        preferred_element_type=jnp.float32) + bf

    return kernel


def make_fused_forward(extracted_layers):
    extracted = tuple(extracted_layers)
    want_conv = 'conv1' in extracted
    want_relu = 'relu1' in extracted
    want_pool = 'pool1' in extracted
    want_fc = 'fc' in extracted
    kernel = _make_kernel(want_conv, want_relu, want_pool, want_fc)

    def fwd(x, wc, bc, wf, bf):
        B, Cin, H, W = x.shape
        Cout = wc.shape[0]
        N = wf.shape[0]
        HW = H * W

        # --- layout plumbing (plain XLA inside jit; reshuffles only, no big
        #     transposes) ----------------------------------------------------
        # im2col straight from NCHW: pad, take the 9 shifted taps, stack them on
        # a new tap axis (a concat-style copy, not a transpose) and flatten.
        xp = jnp.pad(x, ((0, 0), (0, 0), (1, 1), (1, 1)))
        taps = [xp[:, :, kh:kh + H, kw:kw + W]
                for kh in range(3) for kw in range(3)]        # 9 x (B,Cin,H,W)
        xcol = jnp.stack(taps, axis=1).reshape(B, 9 * Cin, HW)  # (B, 9*Cin, HW)
        # Conv weight OIHW -> (Cout, 9*Cin) with (kh,kw,ci) ordering matching
        # xcol rows; this permutation acts on a 32x36 tensor, i.e. it is free.
        wcT = jnp.transpose(wc, (0, 2, 3, 1)).reshape(Cout, 9 * Cin)

        out_shapes = []
        if want_conv:
            out_shapes.append(jax.ShapeDtypeStruct((B, Cout, HW), jnp.float32))
        if want_relu:
            out_shapes.append(jax.ShapeDtypeStruct((B, Cout, HW), jnp.float32))
        if want_pool:
            out_shapes.append(jax.ShapeDtypeStruct((B, Cout, 1), jnp.float32))
        if want_fc:
            out_shapes.append(jax.ShapeDtypeStruct((B, N, 1), jnp.float32))

        vmem = pl.BlockSpec(memory_space=pltpu.MemorySpace.VMEM)
        outs = pl.pallas_call(
            kernel,
            out_shape=tuple(out_shapes),
            in_specs=[vmem] * 5,
            out_specs=tuple(vmem for _ in out_shapes),
        )(xcol, wcT, bc.reshape(Cout, 1), wf, bf.reshape(N, 1))
        if not isinstance(outs, (tuple, list)):
            outs = (outs,)

        # Back to PyTorch layouts with trailing-dim reshapes only (no transpose,
        # no extra HBM round trip).
        results = []
        it = iter(outs)
        if want_conv:
            results.append(next(it).reshape(B, Cout, H, W))
        if want_relu:
            results.append(next(it).reshape(B, Cout, H, W))
        if want_pool:
            results.append(next(it).reshape(B, Cout, 1, 1))
        if want_fc:
            results.append(next(it).reshape(B, N))
        return results

    return jax.jit(fwd)


# ---------------------------------------------------------------------------
# FeatureExtractor — same semantics as the PyTorch forward loop for this
# submodule: run the layers in order, flatten before 'fc', collect the outputs
# of `extracted_layers` in layer order.  Whole chain runs in one fused kernel.
# ---------------------------------------------------------------------------
class FeatureExtractor:
    def __init__(self, params, extracted_layers):
        self.params = params                       # (wc, bc, wf, bf), torch-shaped
        self.extracted_layers = tuple(extracted_layers)
        if any(name in self.extracted_layers for name in _LAYERS):
            self._forward = make_fused_forward(self.extracted_layers)
        else:
            self._forward = None

    def __call__(self, x):
        if self._forward is None:
            return []
        wc, bc, wf, bf = self.params
        return self._forward(x, wc, bc, wf, bf)


def make_params(key, cin=4, cout=32, num_classes=10):
    k1, k2, k3, k4 = jax.random.split(key, 4)
    wc = jax.random.normal(k1, (cout, cin, 3, 3), jnp.float32) * 0.1    # OIHW
    bc = jax.random.normal(k2, (cout,), jnp.float32) * 0.1
    wf = jax.random.normal(k3, (num_classes, cout), jnp.float32) * 0.1  # (out,in)
    bf = jax.random.normal(k4, (num_classes,), jnp.float32) * 0.1
    return wc, bc, wf, bf


def reference(x, wc, bc, wf, bf, extracted):
    """Pure-JAX reference of the same submodule, for verification."""
    outs = []
    y = lax.conv_general_dilated(x, wc, (1, 1), 'SAME',
                                 dimension_numbers=('NCHW', 'OIHW', 'NCHW'))
    y = y + bc[None, :, None, None]
    if 'conv1' in extracted:
        outs.append(y)
    y = jnp.maximum(y, 0.0)
    if 'relu1' in extracted:
        outs.append(y)
    p = jnp.mean(y, axis=(2, 3), keepdims=True)
    if 'pool1' in extracted:
        outs.append(p)
    z = p.reshape(p.shape[0], -1) @ wf.T + bf
    if 'fc' in extracted:
        outs.append(z)
    return outs


if __name__ == "__main__":
    key = jax.random.PRNGKey(0)
    kx, kp = jax.random.split(key)

    x = jax.random.normal(kx, (2, 4, 16, 16), jnp.float32)   # NCHW, like PyTorch
    params = make_params(kp)

    # Primary config (matches the original example): extract conv1 and fc.
    extracted_layers = ('conv1', 'fc')
    extractor = FeatureExtractor(params, extracted_layers)
    outs = jax.block_until_ready(extractor(x))

    ref_outs = reference(x, *params, extracted_layers)
    assert len(outs) == len(ref_outs)
    for o, r in zip(outs, ref_outs):
        assert o.shape == r.shape, (o.shape, r.shape)
        assert jnp.allclose(o, r, atol=1e-4, rtol=1e-4)

    # Also exercise the other kernel variants: fc-only (conv map never
    # materialized) and all layers (relu1/pool1 emitted from the kernel).
    for layers in (('fc',), ('conv1', 'relu1', 'pool1', 'fc')):
        ex = FeatureExtractor(params, layers)
        got = jax.block_until_ready(ex(x))
        want = reference(x, *params, layers)
        assert len(got) == len(want)
        for o, r in zip(got, want):
            assert o.shape == r.shape, (o.shape, r.shape)
            assert jnp.allclose(o, r, atol=1e-4, rtol=1e-4)

    print("KERNEL_OK")
</pallas_src>

<mosaic_0001>
module attributes {stable_mosaic.version = 11 : i64} {
  func.func @kernel(%arg0: memref<2x36x256xf32, #tpu.memory_space<vmem>>, %arg1: memref<32x36xf32, #tpu.memory_space<vmem>>, %arg2: memref<32x1xf32, #tpu.memory_space<vmem>>, %arg3: memref<10x32xf32, #tpu.memory_space<vmem>>, %arg4: memref<10x1xf32, #tpu.memory_space<vmem>>, %arg5: memref<2x32x256xf32, #tpu.memory_space<vmem>>, %arg6: memref<2x10x1xf32, #tpu.memory_space<vmem>>) attributes {dimension_semantics = [], scalar_prefetch = 0 : i64, scratch_operands = 0 : i64, tpu.core_type = #tpu.core_type<tc>} {
    %c0 = arith.constant 0 : index
    %c0_0 = arith.constant 0 : index
    %0 = vector.load %arg1[%c0, %c0_0] : memref<32x36xf32, #tpu.memory_space<vmem>>, vector<32x36xf32>
    %c0_1 = arith.constant 0 : index
    %c0_2 = arith.constant 0 : index
    %1 = vector.load %arg2[%c0_1, %c0_2] : memref<32x1xf32, #tpu.memory_space<vmem>>, vector<32x1xf32>
    %c0_3 = arith.constant 0 : index
    %c0_4 = arith.constant 0 : index
    %2 = vector.load %arg3[%c0_3, %c0_4] : memref<10x32xf32, #tpu.memory_space<vmem>>, vector<10x32xf32>
    %c0_5 = arith.constant 0 : index
    %c0_6 = arith.constant 0 : index
    %3 = vector.load %arg4[%c0_5, %c0_6] : memref<10x1xf32, #tpu.memory_space<vmem>>, vector<10x1xf32>
    %c0_7 = arith.constant 0 : index
    %c0_8 = arith.constant 0 : index
    %c0_9 = arith.constant 0 : index
    %4 = vector.load %arg0[%c0_7, %c0_8, %c0_9] : memref<2x36x256xf32, #tpu.memory_space<vmem>>, vector<1x36x256xf32>
    %5 = vector.shape_cast %4 : vector<1x36x256xf32> to vector<36x256xf32>
    %cst = arith.constant dense<0.000000e+00> : vector<32x256xf32>
    %6 = tpu.matmul %0, %5, %cst {dimension_numbers = #tpu.dot_dimension_numbers<[1], [0], [0], [1], [0, 0, 1, 1], [], []>} : vector<32x36xf32>, vector<36x256xf32>, vector<32x256xf32> -> vector<32x256xf32>
    %7 = vector.broadcast %1 : vector<32x1xf32> to vector<32x256xf32>
    %8 = arith.addf %6, %7 : vector<32x256xf32>
    %c0_10 = arith.constant 0 : index
    %c0_11 = arith.constant 0 : index
    %c0_12 = arith.constant 0 : index
    %9 = vector.load %arg5[%c0_10, %c0_11, %c0_12] : memref<2x32x256xf32, #tpu.memory_space<vmem>>, vector<1x32x256xf32>
    %10 = vector.shape_cast %9 : vector<1x32x256xf32> to vector<32x256xf32>
    %11 = vector.shape_cast %8 : vector<32x256xf32> to vector<1x32x256xf32>
    tpu.vector_store %arg5[%c0_10, %c0_11, %c0_12], %11 {strides = array<i32>} : memref<2x32x256xf32, #tpu.memory_space<vmem>>, vector<1x32x256xf32>,
    %cst_13 = arith.constant 0.000000e+00 : f32
    %12 = vector.broadcast %cst_13 : f32 to vector<32x256xf32>
    %13 = arith.maximumf %8, %12 : vector<32x256xf32>
    %cst_14 = arith.constant dense<0.000000e+00> : vector<32xf32>
    %14 = vector.multi_reduction <add>, %13, %cst_14 [1] : vector<32x256xf32> to vector<32xf32>
    %15 = vector.shape_cast %14 : vector<32xf32> to vector<32x1xf32>
    %cst_15 = arith.constant 3.906250e-03 : f32
    %16 = vector.broadcast %cst_15 : f32 to vector<32x1xf32>
    %17 = arith.mulf %15, %16 : vector<32x1xf32>
    %cst_16 = arith.constant dense<0.000000e+00> : vector<10x1xf32>
    %18 = tpu.matmul %2, %17, %cst_16 {dimension_numbers = #tpu.dot_dimension_numbers<[1], [0], [0], [1], [0, 0, 1, 1], [], []>} : vector<10x32xf32>, vector<32x1xf32>, vector<10x1xf32> -> vector<10x1xf32>
    %19 = arith.addf %18, %3 : vector<10x1xf32>
    %c0_17 = arith.constant 0 : index
    %c0_18 = arith.constant 0 : index
    %c0_19 = arith.constant 0 : index
    %20 = vector.load %arg6[%c0_17, %c0_18, %c0_19] : memref<2x10x1xf32, #tpu.memory_space<vmem>>, vector<1x10x1xf32>
    %21 = vector.shape_cast %20 : vector<1x10x1xf32> to vector<10x1xf32>
    %22 = vector.shape_cast %19 : vector<10x1xf32> to vector<1x10x1xf32>
    tpu.vector_store %arg6[%c0_17, %c0_18, %c0_19], %22 {strides = array<i32>} : memref<2x10x1xf32, #tpu.memory_space<vmem>>, vector<1x10x1xf32>,
    %c1 = arith.constant 1 : index
    %c0_20 = arith.constant 0 : index
    %c0_21 = arith.constant 0 : index
    %23 = vector.load %arg0[%c1, %c0_20, %c0_21] : memref<2x36x256xf32, #tpu.memory_space<vmem>>, vector<1x36x256xf32>
    %24 = vector.shape_cast %23 : vector<1x36x256xf32> to vector<36x256xf32>
    %cst_22 = arith.constant dense<0.000000e+00> : vector<32x256xf32>
    %25 = tpu.matmul %0, %24, %cst_22 {dimension_numbers = #tpu.dot_dimension_numbers<[1], [0], [0], [1], [0, 0, 1, 1], [], []>} : vector<32x36xf32>, vector<36x256xf32>, vector<32x256xf32> -> vector<32x256xf32>
    %26 = vector.broadcast %1 : vector<32x1xf32> to vector<32x256xf32>
    %27 = arith.addf %25, %26 : vector<32x256xf32>
    %c1_23 = arith.constant 1 : index
    %c0_24 = arith.constant 0 : index
    %c0_25 = arith.constant 0 : index
    %28 = vector.load %arg5[%c1_23, %c0_24, %c0_25] : memref<2x32x256xf32, #tpu.memory_space<vmem>>, vector<1x32x256xf32>
    %29 = vector.shape_cast %28 : vector<1x32x256xf32> to vector<32x256xf32>
    %30 = vector.shape_cast %27 : vector<32x256xf32> to vector<1x32x256xf32>
    tpu.vector_store %arg5[%c1_23, %c0_24, %c0_25], %30 {strides = array<i32>} : memref<2x32x256xf32, #tpu.memory_space<vmem>>, vector<1x32x256xf32>,
    %cst_26 = arith.constant 0.000000e+00 : f32
    %31 = vector.broadcast %cst_26 : f32 to vector<32x256xf32>
    %32 = arith.maximumf %27, %31 : vector<32x256xf32>
    %cst_27 = arith.constant dense<0.000000e+00> : vector<32xf32>
    %33 = vector.multi_reduction <add>, %32, %cst_27 [1] : vector<32x256xf32> to vector<32xf32>
    %34 = vector.shape_cast %33 : vector<32xf32> to vector<32x1xf32>
    %cst_28 = arith.constant 3.906250e-03 : f32
    %35 = vector.broadcast %cst_28 : f32 to vector<32x1xf32>
    %36 = arith.mulf %34, %35 : vector<32x1xf32>
    %cst_29 = arith.constant dense<0.000000e+00> : vector<10x1xf32>
    %37 = tpu.matmul %2, %36, %cst_29 {dimension_numbers = #tpu.dot_dimension_numbers<[1], [0], [0], [1], [0, 0, 1, 1], [], []>} : vector<10x32xf32>, vector<32x1xf32>, vector<10x1xf32> -> vector<10x1xf32>
    %38 = arith.addf %37, %3 : vector<10x1xf32>
    %c1_30 = arith.constant 1 : index
    %c0_31 = arith.constant 0 : index
    %c0_32 = arith.constant 0 : index
    %39 = vector.load %arg6[%c1_30, %c0_31, %c0_32] : memref<2x10x1xf32, #tpu.memory_space<vmem>>, vector<1x10x1xf32>
    %40 = vector.shape_cast %39 : vector<1x10x1xf32> to vector<10x1xf32>
    %41 = vector.shape_cast %38 : vector<10x1xf32> to vector<1x10x1xf32>
    tpu.vector_store %arg6[%c1_30, %c0_31, %c0_32], %41 {strides = array<i32>} : memref<2x10x1xf32, #tpu.memory_space<vmem>>, vector<1x10x1xf32>,
    return
  }
}

</mosaic_0001>

<bundles_post_ra>
// kernel: fwd.1
= control target key start
LH: loop header
LB: loop body
LE: loop exit
PB: predicated region body
PF: predicated region fallthrough
CT: control target
= control target key end

     0   :  { %v622_v3 = vmov 0.0   ;;  %v623_v4 = vmov 0   ;;  %vm77_vm0 = vcmask 1043456   ;;  %vm64_vm1 = vcmask 293888   ;;  %s895_s0 = inlined_call_operand.vmem [shape: f32[2,36,256], index: 0, kind: input, shape index: {}]   ;;  %s896_s2 = inlined_call_operand.vmem [shape: f32[32,1], index: 2, kind: input, shape index: {}]   ;;  %s897_s1 = inlined_call_operand.vmem [shape: f32[32,36], index: 1, kind: input, shape index: {}]   ;;  %s898_s5 = inlined_call_operand.vmem [shape: f32[2,32,256], index: 5, kind: output, shape index: {0}]   ;;  %s899_s3 = inlined_call_operand.vmem [shape: f32[10,32], index: 3, kind: input, shape index: {}]   ;;  %s900_s4 = inlined_call_operand.vmem [shape: f32[10,1], index: 4, kind: input, shape index: {}]   ;;  %s901_s6 = inlined_call_operand.vmem [shape: f32[2,10,1], index: 6, kind: output, shape index: {1}]  }
   0x1   :  { %v35_v0 = vld [vmem:[%s895_s0 + $0x8] sm:$0xff]  ;;  %v37_v1 = vld [vmem:[%s895_s0 + $0x18] sm:$0xff]  ;;  %v34_v2 = vld [vmem:[%s895_s0] sm:$0xff]  ;;  %148 = vmatprep.mubr.f32.mxu0 %v622_v3  ;;  %620 = vset.pattern.permute.xlu0 %v623_v4  ;;  %vm205_vm2 = vcmask 261120   ;;  %vm289_vm3 = vcmask 1024   ;;  %vm287_vm4 = vcmask 7168  }
   0x2   :  { %v586_v5 = vpack.c.bf16 %v37_v1, %v35_v0  ;;  %v36_v6 = vld [vmem:[%s895_s0 + $0x10] sm:$0xff]  ;;  %v39_v7 = vld [vmem:[%s895_s0 + $0x28] sm:$0xff]  ;;  %v41_v8 = vld [vmem:[%s895_s0 + $0x38] sm:$0xff]  ;;  %621 = vset.pattern.permute.xlu1 %v623_v4 }
   0x3   :  { %v588_v9 = vpack.c.bf16 %v36_v6, %v34_v2  ;;  %v590_v10 = vpack.c.bf16 %v41_v8, %v39_v7  ;;  %v38_v11 = vld [vmem:[%s895_s0 + $0x20] sm:$0xff]  ;;  %v40_v12 = vld [vmem:[%s895_s0 + $0x30] sm:$0xff]  ;;  %v43_v16 = vld [vmem:[%s895_s0 + $0x48] sm:$0xf] }
   0x4   :  { %587 = vmatprep.subr.bf16.mxu0 %v586_v5  ;;  %v592_v13 = vpack.c.bf16 %v40_v12, %v38_v11  ;;  %v26_v14 = vld [vmem:[%s896_s2] sm:$0xff]  ;;  %v28_v15 = vld [vmem:[%s896_s2 + $0x10] sm:$0xff]  ;;  %v27_v17 = vld [vmem:[%s896_s2 + $0x8] sm:$0xff] }
   0x5   :  { %589 = vmatpush1.bf16.msra.mxu0 %v588_v9  ;;  %46 = vperm.xlu0 %620, %v26_v14   ;;  %v29_v18 = vld [vmem:[%s896_s2 + $0x18] sm:$0xff]  ;;  %v42_v19 = vld [vmem:[%s895_s0 + $0x40] sm:$0xf]  ;;  %v715_v21 = vld [vmem:[%s897_s1 + $0x8] sm:$0xff] }
   0x6   :  { %591 = vmatprep.subr.bf16.mxu0 %v590_v10  ;;  %56 = vperm.xlu1 %621, %v28_v15   ;;  %v706_v20 = vld [vmem:[%s897_s1] sm:$0xff]  ;;  %v723_v22 = vld [vmem:[%s897_s1 + $0x10] sm:$0xff]  ;;  %v731_v23 = vld [vmem:[%s897_s1 + $0x18] sm:$0xff] }
   0x7   :  { %v30_v56 = vld [vmem:[%s899_s3] sm:$0xff]  ;;  %v525_v0 = vld [vmem:[%s895_s0 + $0x58] sm:$0xff]  ;;  %v527_v1 = vld [vmem:[%s895_s0 + $0x68] sm:$0xff] }
   0x8   :  { %572 = vmatprep.mubr.msk.f32.mxu1 %vm205_vm2, %v30_v56  ;;  %v602_v6 = vpack.c.bf16 %v527_v1, %v525_v0  ;;  %v524_v7 = vld [vmem:[%s895_s0 + $0x50] sm:$0xff]  ;;  %v526_v8 = vld [vmem:[%s895_s0 + $0x60] sm:$0xff]  ;;  %v529_v9 = vld [vmem:[%s895_s0 + $0x78] sm:$0xff] }
   0x9   :  { %593 = vmatpush1.bf16.msra.mxu0 %v592_v13  ;;  %51 = vperm.xlu0 %620, %v27_v17   ;;  %v531_v10 = vld [vmem:[%s895_s0 + $0x88] sm:$0xff]  ;;  %v604_v12 = vpack.c.bf16 %v526_v8, %v524_v7  ;;  %v528_v14 = vld [vmem:[%s895_s0 + $0x70] sm:$0xff]  ;;  %v530_v15 = vld [vmem:[%s895_s0 + $0x80] sm:$0xff] }
   0xa   :  { %516 = vmatprep.subr.msk.mxu0 %vm77_vm0, %v43_v16  ;;  %61 = vperm.xlu1 %621, %v29_v18   ;;  %v801_v11 = vld [vmem:[%s899_s3 + $0x8] sm:$0x3]  ;;  %v606_v13 = vpack.c.bf16 %v531_v10, %v529_v9  ;;  %v608_v16 = vpack.c.bf16 %v530_v15, %v528_v14  ;;  %v533_v17 = vld [vmem:[%s895_s0 + $0x98] sm:$0xf]  ;;  %v532_v18 = vld [vmem:[%s895_s0 + $0x90] sm:$0xf] }
   0xd   :  { %517 = vmatpush1.msk.msra.mxu0 %vm77_vm0, %v42_v19  ;;  %v834_v19 = vld [vmem:[%s900_s4 + $0x8] sm:$0x3] }
   0xe   :  { %518 = vmatmul.mubr.msk.f32.vlgmr.msra.gmra.mrb[0].mxu0 %vm64_vm1, %v706_v20 }
   0xf   :  { %154 = vmatprep.mubr.f32.mxu0 %v622_v3 }
  0x12   :  { %519 = vmatmul.mubr.msk.f32.gmra.mrb[2].mxu0 %vm64_vm1, %v715_v21 }
  0x13   :  { %160 = vmatprep.mubr.f32.mxu0 %v622_v3 }
  0x16   :  { %520 = vmatmul.mubr.msk.f32.gmra.mrb[4].mxu0 %vm64_vm1, %v723_v22 }
  0x17   :  { %166 = vmatprep.mubr.f32.mxu0 %v622_v3 }
  0x1a   :  { %521 = vmatmul.mubr.msk.f32.gmra.mrb[6].mxu0 %vm64_vm1, %v731_v23 }
  0x1b   :  { %583 = vmatprep.mubr.msk.f32.mxu0 %vm205_vm2, %v30_v56 }
  0x84   :  { %v735_v24 = vpop.permute.xlu0 %46 }
  0x85   :  { %v748_v35 = vpop.permute.xlu1 %56 }
  0x88   :  { %v739_v29 = vpop.permute.xlu0 %51 }
  0x89   :  { %v762_v46 = vpop.permute.xlu1 %61 }
  0xe1   :  { %v150_v25 = vpop.f32.mrb[0].mxu0 }
  0xe2   :  { %v151_v26 = vadd.f32 %v150_v25, %v735_v24  ;;  %v152_v27 = vpop.f32.mrb[1].mxu0 }
  0xe3   :  { %v153_v28 = vadd.f32 %v152_v27, %v735_v24 }
  0xe4   :  { %173 = vst [vmem:[%s898_s5] sm:$0xff] %v151_v26  ;;  %v181_v30 = vmax.f32 %v151_v26, 0.0 }
  0xe5   :  { %174 = vst [vmem:[%s898_s5 + $0x8] sm:$0xff] %v153_v28  ;;  %v182_v31 = vmax.f32 %v153_v28, 0.0  ;;  %v156_v32 = vpop.f32.mrb[2].mxu0 }
  0xe6   :  { %v157_v33 = vadd.f32 %v156_v32, %v739_v29  ;;  %v158_v34 = vpop.f32.mrb[3].mxu0 }
  0xe7   :  { %v159_v36 = vadd.f32 %v158_v34, %v739_v29  ;;  %v189_v37 = vadd.f32 %v182_v31, %v181_v30 }
  0xe8   :  { %175 = vst [vmem:[%s898_s5 + $0x10] sm:$0xff] %v157_v33  ;;  %v183_v38 = vmax.f32 %v157_v33, 0.0 }
  0xe9   :  { %176 = vst [vmem:[%s898_s5 + $0x18] sm:$0xff] %v159_v36  ;;  %v184_v39 = vmax.f32 %v159_v36, 0.0  ;;  %v162_v40 = vpop.f32.mrb[4].mxu0  ;;  %190 = vadd.xlane.f32.xlu0 %v189_v37 }
  0xea   :  { %v163_v41 = vadd.f32 %v162_v40, %v748_v35  ;;  %v164_v42 = vpop.f32.mrb[5].mxu0 }
  0xeb   :  { %v165_v43 = vadd.f32 %v164_v42, %v748_v35  ;;  %v192_v44 = vadd.f32 %v184_v39, %v183_v38 }
  0xec   :  { %177 = vst [vmem:[%s898_s5 + $0x20] sm:$0xff] %v163_v41  ;;  %v185_v45 = vmax.f32 %v163_v41, 0.0 }
  0xed   :  { %178 = vst [vmem:[%s898_s5 + $0x28] sm:$0xff] %v165_v43  ;;  %v186_v47 = vmax.f32 %v165_v43, 0.0  ;;  %v168_v48 = vpop.f32.mrb[6].mxu0  ;;  %193 = vadd.xlane.f32.xlu1 %v192_v44 }
  0xee   :  { %v169_v49 = vadd.f32 %v168_v48, %v762_v46  ;;  %v170_v50 = vpop.f32.mrb[7].mxu0 }
  0xef   :  { %v171_v51 = vadd.f32 %v170_v50, %v762_v46  ;;  %v195_v52 = vadd.f32 %v186_v47, %v185_v45 }
  0xf0   :  { %179 = vst [vmem:[%s898_s5 + $0x30] sm:$0xff] %v169_v49  ;;  %v187_v53 = vmax.f32 %v169_v49, 0.0 }
  0xf1   :  { %180 = vst [vmem:[%s898_s5 + $0x38] sm:$0xff] %v171_v51  ;;  %v188_v54 = vmax.f32 %v171_v51, 0.0  ;;  %196 = vadd.xlane.f32.xlu0 %v195_v52 }
  0xf3   :  { %v198_v55 = vadd.f32 %v188_v54, %v187_v53 }
  0xf5   :  { %199 = vadd.xlane.f32.xlu0 %v198_v55 }
 0x176   :  { %v191_v57 = vpop.xlane.xlu0 %190 }
 0x177   :  { %v201_v59 = vmul.f32 0.00390625, %v191_v57 }
 0x17a   :  { %v194_v58 = vpop.xlane.xlu1 %193 }
 0x17b   :  { %v202_v60 = vmul.f32 0.00390625, %v194_v58 }
 0x17d   :  { %v594_v61 = vpack.c.bf16 %v202_v60, %v201_v59 }
 0x17e   :  { %v197_v62 = vpop.xlane.xlu0 %196 }
 0x17f   :  { %595 = vmatprep.subr.bf16.mxu1 %v594_v61  ;;  %v203_v2 = vmul.f32 0.00390625, %v197_v62 }
 0x180   :  { %597 = vmatpush3.bf16.msra.mxu1 %v594_v61 }
 0x182   :  { %v200_v63 = vpop.xlane.xlu0 %199 }
 0x183   :  { %v204_v4 = vmul.f32 0.00390625, %v200_v63 }
 0x185   :  { %v598_v5 = vpack.c.bf16 %v204_v4, %v203_v2 }
 0x187   :  { %599 = vmatprep.subr.bf16.mxu1 %v598_v5 }
 0x188   :  { %601 = vmatpush3.bf16.msra.mxu1 %v598_v5 }
 0x189   :  { %603 = vmatprep.subr.bf16.mxu1 %v602_v6 }
 0x18b   :  { %573 = vmatmul.mubr.msk.f32.vlgmr.msra.gmra.mrb[0].mxu1 %vm205_vm2, %v801_v11 }
 0x18c   :  { %605 = vmatpush1.bf16.msra.mxu1 %v604_v12  ;;  %372 = vmatprep.mubr.f32.mxu1 %v622_v3 }
 0x18d   :  { %607 = vmatprep.subr.bf16.mxu1 %v606_v13 }
 0x190   :  { %609 = vmatpush1.bf16.msra.mxu1 %v608_v16 }
 0x191   :  { %534 = vmatprep.subr.msk.mxu1 %vm77_vm0, %v533_v17 }
 0x194   :  { %535 = vmatpush1.msk.msra.mxu1 %vm77_vm0, %v532_v18 }
 0x195   :  { %536 = vmatmul.mubr.msk.f32.vlgmr.msra.gmra.mrb[2].mxu1 %vm64_vm1, %v706_v20  ;;  %v839_v20 = vld [vmem:[%s900_s4] sm:$0xff] }
 0x196   :  { %378 = vmatprep.mubr.f32.mxu1 %v622_v3 }
 0x199   :  { %537 = vmatmul.mubr.msk.f32.gmra.mrb[4].mxu1 %vm64_vm1, %v715_v21 }
 0x19a   :  { %384 = vmatprep.mubr.f32.mxu1 %v622_v3 }
 0x19d   :  { %538 = vmatmul.mubr.msk.f32.gmra.mrb[6].mxu1 %vm64_vm1, %v723_v22 }
 0x19e   :  { %390 = vmatprep.mubr.f32.mxu1 %v622_v3 }
 0x1a1   :  { %539 = vmatmul.mubr.msk.f32.gmra.mrb[8].mxu1 %vm64_vm1, %v731_v23 }
 0x25e   :  { %v574_v21 = vpop.f32.mrb[0].mxu1 }
 0x25f   :  { %v284_v25 = vadd.f32 %v574_v21, %v834_v19  ;;  %v278_v22 = vpop.f32.mrb[1].mxu1 }
 0x260   :  { %v279_v3 = vadd.f32 %v278_v22, %v839_v20 }
 0x261   :  { %290 = vst.msk [vmem:[%s901_s6 + $0x8] sm:$0x3] %vm289_vm3, %v284_v25 }
 0x262   :  { %288 = vst.msk [vmem:[%s901_s6] sm:$0xff] %vm287_vm4, %v279_v3 }
 0x268   :  { %v374_v23 = vpop.f32.mrb[2].mxu1 }
 0x269   :  { %v375_v26 = vadd.f32 %v374_v23, %v735_v24  ;;  %v376_v27 = vpop.f32.mrb[3].mxu1 }
 0x26a   :  { %v377_v28 = vadd.f32 %v376_v27, %v735_v24 }
 0x26b   :  { %540 = vst [vmem:[%s898_s5 + $0x40] sm:$0xff] %v375_v26  ;;  %v406_v30 = vmax.f32 %v375_v26, 0.0 }
 0x26c   :  { %541 = vst [vmem:[%s898_s5 + $0x48] sm:$0xff] %v377_v28  ;;  %v407_v31 = vmax.f32 %v377_v28, 0.0  ;;  %v380_v32 = vpop.f32.mrb[4].mxu1 }
 0x26d   :  { %v381_v33 = vadd.f32 %v380_v32, %v739_v29  ;;  %v382_v34 = vpop.f32.mrb[5].mxu1 }
 0x26e   :  { %v383_v36 = vadd.f32 %v382_v34, %v739_v29  ;;  %v414_v37 = vadd.f32 %v407_v31, %v406_v30 }
 0x26f   :  { %542 = vst [vmem:[%s898_s5 + $0x50] sm:$0xff] %v381_v33  ;;  %v408_v24 = vmax.f32 %v381_v33, 0.0 }
 0x270   :  { %543 = vst [vmem:[%s898_s5 + $0x58] sm:$0xff] %v383_v36  ;;  %v409_v38 = vmax.f32 %v383_v36, 0.0  ;;  %v386_v39 = vpop.f32.mrb[6].mxu1  ;;  %415 = vadd.xlane.f32.xlu1 %v414_v37 }
 0x271   :  { %v387_v40 = vadd.f32 %v386_v39, %v748_v35  ;;  %v388_v41 = vpop.f32.mrb[7].mxu1 }
 0x272   :  { %v389_v42 = vadd.f32 %v388_v41, %v748_v35  ;;  %v417_v43 = vadd.f32 %v409_v38, %v408_v24 }
 0x273   :  { %544 = vst [vmem:[%s898_s5 + $0x60] sm:$0xff] %v387_v40  ;;  %v410_v29 = vmax.f32 %v387_v40, 0.0 }
 0x274   :  { %545 = vst [vmem:[%s898_s5 + $0x68] sm:$0xff] %v389_v42  ;;  %v411_v44 = vmax.f32 %v389_v42, 0.0  ;;  %v392_v45 = vpop.f32.mrb[8].mxu1  ;;  %418 = vadd.xlane.f32.xlu0 %v417_v43 }
 0x275   :  { %v393_v47 = vadd.f32 %v392_v45, %v762_v46  ;;  %v394_v48 = vpop.f32.mrb[9].mxu1 }
 0x276   :  { %v395_v49 = vadd.f32 %v394_v48, %v762_v46  ;;  %v420_v50 = vadd.f32 %v411_v44, %v410_v29 }
 0x277   :  { %546 = vst [vmem:[%s898_s5 + $0x70] sm:$0xff] %v393_v47  ;;  %v412_v35 = vmax.f32 %v393_v47, 0.0 }
 0x278   :  { %547 = vst [vmem:[%s898_s5 + $0x78] sm:$0xff] %v395_v49  ;;  %v413_v51 = vmax.f32 %v395_v49, 0.0  ;;  %421 = vadd.xlane.f32.xlu1 %v420_v50 }
 0x27a   :  { %v423_v52 = vadd.f32 %v413_v51, %v412_v35 }
 0x27c   :  { %424 = vadd.xlane.f32.xlu0 %v423_v52 }
 0x2fd   :  { %v416_v53 = vpop.xlane.xlu1 %415 }
 0x2fe   :  { %v426_v55 = vmul.f32 0.00390625, %v416_v53 }
 0x301   :  { %v419_v54 = vpop.xlane.xlu0 %418 }
 0x302   :  { %v427_v56 = vmul.f32 0.00390625, %v419_v54 }
 0x304   :  { %v610_v57 = vpack.c.bf16 %v427_v56, %v426_v55 }
 0x305   :  { %v422_v46 = vpop.xlane.xlu1 %421 }
 0x306   :  { %611 = vmatprep.subr.bf16.mxu0 %v610_v57  ;;  %v428_v59 = vmul.f32 0.00390625, %v422_v46 }
 0x307   :  { %613 = vmatpush3.bf16.msra.mxu0 %v610_v57 }
 0x309   :  { %v425_v58 = vpop.xlane.xlu0 %424 }
 0x30a   :  { %v429_v60 = vmul.f32 0.00390625, %v425_v58 }
 0x30c   :  { %v614_v61 = vpack.c.bf16 %v429_v60, %v428_v59 }
 0x30e   :  { %615 = vmatprep.subr.bf16.mxu0 %v614_v61 }
 0x30f   :  { %617 = vmatpush3.bf16.msra.mxu0 %v614_v61 }
 0x312   :  { %584 = vmatmul.mubr.msk.f32.vlgmr.msra.gmra.mrb[8].mxu0 %vm205_vm2, %v801_v11 }
 0x3e5   :  { %v585_v62 = vpop.f32.mrb[8].mxu0 }
 0x3e6   :  { %v502_v63 = vadd.f32 %v585_v62, %v834_v19  ;;  %v496_v0 = vpop.f32.mrb[9].mxu0 }
 0x3e7   :  { %v497_v1 = vadd.f32 %v496_v0, %v839_v20 }
 0x3e8   :  { %551 = vst.msk [vmem:[%s901_s6 + $0x18] sm:$0x3] %vm289_vm3, %v502_v63 }
 0x3e9   :  { %550 = vst.msk [vmem:[%s901_s6 + $0x10] sm:$0xff] %vm287_vm4, %v497_v1 }

</bundles_post_ra>
